<compile_context>
chip_gen: v7x
topology: tpu7x:2x2x1
jax: 0.10.0
libtpu: 0.0.40
codegen_flags: <defaults>
</compile_context>

<pallas_src>
import jax
import jax.numpy as jnp
from jax.experimental import pallas as pl
from jax.experimental.pallas import tpu as pltpu

_U8_SCALE = 1.0 / 255.0


def _convert_pair_kernel(l_ref, r_ref, ol_ref, or_ref):
    # Pure VPU work: widen uint8 -> f32, scale by 1/255, cast to target dtype.
    ol_ref[...] = (l_ref[...].astype(jnp.float32) * _U8_SCALE).astype(ol_ref.dtype)
    or_ref[...] = (r_ref[...].astype(jnp.float32) * _U8_SCALE).astype(or_ref.dtype)


def _choose_lane_width(total, max_lanes=2048):
    """Largest power-of-2 multiple of 128 (<= max_lanes) dividing `total`.

    Returns 0 if no such divisor exists (then we fall back to the natural
    image width as the lane dim).
    """
    best = 0
    lw = 128
    while lw <= max_lanes:
        if total % lw == 0:
            best = lw
        lw *= 2
    return best


def _lane_dense_view(shape):
    """Pick a (rows, lanes) 2-D view of a row-major array with `shape`."""
    total = 1
    for d in shape:
        total *= d
    lw = _choose_lane_width(total)
    if lw:
        return total // lw, lw
    w = shape[-1]
    return total // w, w


def _choose_row_tile(m, w, out_itemsize, budget_bytes=8 * 1024 * 1024):
    """Pick a row-tile so double-buffered blocks stay well inside VMEM.

    Resident bytes per grid step ~= 2 buffers * 2 images * (1 + out_itemsize)
    bytes * tm * w.  Budget ~8 MiB keeps plenty of headroom even on v7x
    (64 MiB physical VMEM, 32 MiB scoped default).
    """
    bytes_per_row = 2 * 2 * (1 + out_itemsize) * w
    tm = max(budget_bytes // bytes_per_row, 32)
    tm = max((tm // 32) * 32, 32)  # uint8 packs 32 sublanes per vreg
    if tm >= m:
        return m                   # single full block (block == full dim is legal)
    return tm


def _convert_pair_u8(img_l, img_r, out_dtype):
    """uint8 stereo pair (same shape, e.g. NCHW) -> out_dtype in [0, 1]."""
    assert img_l.dtype == jnp.uint8 and img_r.dtype == jnp.uint8
    assert img_l.shape == img_r.shape, "stereo pair must share a shape"

    shape = img_l.shape
    m, w = _lane_dense_view(shape)

    # Contiguous row-major reshape: no data movement, just a new 2-D view.
    xl = img_l.reshape(m, w)
    xr = img_r.reshape(m, w)

    out_itemsize = jnp.dtype(out_dtype).itemsize
    tm = _choose_row_tile(m, w, out_itemsize)
    grid = (pl.cdiv(m, tm),)

    # Lane dim is either a multiple of 128 or the full array extent (legal);
    # row tile is a multiple of 32 whenever it is not the full extent.
    in_spec = pl.BlockSpec((tm, w), lambda i: (i, 0))
    out_spec = pl.BlockSpec((tm, w), lambda i: (i, 0))

    out_l, out_r = pl.pallas_call(
        _convert_pair_kernel,
        out_shape=(
            jax.ShapeDtypeStruct((m, w), out_dtype),
            jax.ShapeDtypeStruct((m, w), out_dtype),
        ),
        grid=grid,
        in_specs=[in_spec, in_spec],
        out_specs=(out_spec, out_spec),
        compiler_params=pltpu.CompilerParams(
            dimension_semantics=("parallel",),   # megacore split on v7x
            vmem_limit_bytes=32 * 1024 * 1024,
        ),
    )(xl, xr)

    return out_l.reshape(shape), out_r.reshape(shape)


class ConvertImageDtype:
    """JAX/Pallas port of the stereo ConvertImageDtype transform.

    Implemented branch: uint8 inputs -> floating target dtype
    (out = img / 255).  Floating inputs are just cast.  Other
    convert_image_dtype branches (float->int, int->int rescale) are not
    implemented.
    """

    def __init__(self, dtype=jnp.float32):
        assert jnp.issubdtype(jnp.dtype(dtype), jnp.floating), (
            "only floating target dtypes implemented")
        # TODO(synk): float->int and int->int convert_image_dtype branches
        # (rescale / bit-shift) are not implemented.
        self.dtype = jnp.dtype(dtype)

    def __call__(self, images, disparities, masks):
        img_left, img_right = images

        if (jnp.issubdtype(img_left.dtype, jnp.floating)
                and jnp.issubdtype(img_right.dtype, jnp.floating)):
            # float -> float is a plain cast; no kernel needed.
            return ((img_left.astype(self.dtype),
                     img_right.astype(self.dtype)), disparities, masks)

        if img_left.dtype != jnp.uint8 or img_right.dtype != jnp.uint8:
            raise NotImplementedError(
                "ConvertImageDtype: only uint8 or floating inputs supported")

        img_left, img_right = _convert_pair_u8(img_left, img_right, self.dtype)
        return (img_left, img_right), disparities, masks


if __name__ == "__main__":
    key = jax.random.PRNGKey(0)
    k1, k2, k3, k4 = jax.random.split(key, 4)

    # NCHW stereo pair, uint8 images.
    B, C, H, W = 2, 4, 16, 16
    img_l = jax.random.randint(k1, (B, C, H, W), 0, 256, dtype=jnp.int32).astype(jnp.uint8)
    img_r = jax.random.randint(k2, (B, C, H, W), 0, 256, dtype=jnp.int32).astype(jnp.uint8)
    disp_l = jax.random.normal(k3, (B, 1, H, W), dtype=jnp.float32)
    disp_r = jax.random.normal(k4, (B, 1, H, W), dtype=jnp.float32)
    mask_l = jnp.ones((B, 1, H, W), dtype=jnp.bool_)
    mask_r = jnp.ones((B, 1, H, W), dtype=jnp.bool_)

    transform = ConvertImageDtype(jnp.float32)
    (out_l, out_r), (d_l, d_r), (m_l, m_r) = transform(
        (img_l, img_r), (disp_l, disp_r), (mask_l, mask_r)
    )
    jax.block_until_ready((out_l, out_r))

    # Reference check against plain JAX.
    ref_l = img_l.astype(jnp.float32) / 255.0
    ref_r = img_r.astype(jnp.float32) / 255.0
    assert out_l.shape == (B, C, H, W) and out_l.dtype == jnp.float32
    assert out_r.shape == (B, C, H, W) and out_r.dtype == jnp.float32
    assert jnp.allclose(out_l, ref_l, atol=1e-6)
    assert jnp.allclose(out_r, ref_r, atol=1e-6)
    # Pass-through members must be untouched.
    assert d_l is disp_l and d_r is disp_r and m_l is mask_l and m_r is mask_r

    print("KERNEL_OK")
</pallas_src>

<mosaic_0001>
module attributes {stable_mosaic.version = 11 : i64} {
  func.func @_convert_pair_kernel(%arg0: i32, %arg1: memref<1x2048xi8, #tpu.memory_space<vmem>>, %arg2: memref<1x2048xi8, #tpu.memory_space<vmem>>, %arg3: memref<1x2048xf32, #tpu.memory_space<vmem>>, %arg4: memref<1x2048xf32, #tpu.memory_space<vmem>>) attributes {dimension_semantics = [#tpu.dimension_semantics<parallel>], iteration_bounds = array<i64: 1>, scalar_prefetch = 0 : i64, scratch_operands = 0 : i64, tpu.core_type = #tpu.core_type<tc>, window_params = [{transform_indices = @transform_0, window_bounds = array<i64: 1, 2048>}, {transform_indices = @transform_1, window_bounds = array<i64: 1, 2048>}, {transform_indices = @transform_2, window_bounds = array<i64: 1, 2048>}, {transform_indices = @transform_3, window_bounds = array<i64: 1, 2048>}]} {
    %c0 = arith.constant 0 : index
    %c0_0 = arith.constant 0 : index
    %0 = vector.load %arg1[%c0, %c0_0] : memref<1x2048xi8, #tpu.memory_space<vmem>>, vector<1x2048xi8>
    %1 = arith.uitofp %0 : vector<1x2048xi8> to vector<1x2048xf32>
    %cst = arith.constant 0.00392156886 : f32
    %2 = vector.broadcast %cst : f32 to vector<1x2048xf32>
    %3 = arith.mulf %1, %2 : vector<1x2048xf32>
    %c0_1 = arith.constant 0 : index
    %c0_2 = arith.constant 0 : index
    %4 = vector.load %arg3[%c0_1, %c0_2] : memref<1x2048xf32, #tpu.memory_space<vmem>>, vector<1x2048xf32>
    tpu.vector_store %arg3[%c0_1, %c0_2], %3 {strides = array<i32>} : memref<1x2048xf32, #tpu.memory_space<vmem>>, vector<1x2048xf32>,
    %c0_3 = arith.constant 0 : index
    %c0_4 = arith.constant 0 : index
    %5 = vector.load %arg2[%c0_3, %c0_4] : memref<1x2048xi8, #tpu.memory_space<vmem>>, vector<1x2048xi8>
    %6 = arith.uitofp %5 : vector<1x2048xi8> to vector<1x2048xf32>
    %cst_5 = arith.constant 0.00392156886 : f32
    %7 = vector.broadcast %cst_5 : f32 to vector<1x2048xf32>
    %8 = arith.mulf %6, %7 : vector<1x2048xf32>
    %c0_6 = arith.constant 0 : index
    %c0_7 = arith.constant 0 : index
    %9 = vector.load %arg4[%c0_6, %c0_7] : memref<1x2048xf32, #tpu.memory_space<vmem>>, vector<1x2048xf32>
    tpu.vector_store %arg4[%c0_6, %c0_7], %8 {strides = array<i32>} : memref<1x2048xf32, #tpu.memory_space<vmem>>, vector<1x2048xf32>,
    return
  }
  func.func @transform_0(%arg0: i32) -> (i32, i32) {
    %c0_i32 = arith.constant 0 : i32
    %c0_i32_0 = arith.constant 0 : i32
    return %arg0, %c0_i32 : i32, i32
  }
  func.func @transform_1(%arg0: i32) -> (i32, i32) {
    %c0_i32 = arith.constant 0 : i32
    %c0_i32_0 = arith.constant 0 : i32
    return %arg0, %c0_i32 : i32, i32
  }
  func.func @transform_2(%arg0: i32) -> (i32, i32) {
    %c0_i32 = arith.constant 0 : i32
    %c0_i32_0 = arith.constant 0 : i32
    return %arg0, %c0_i32 : i32, i32
  }
  func.func @transform_3(%arg0: i32) -> (i32, i32) {
    %c0_i32 = arith.constant 0 : i32
    %c0_i32_0 = arith.constant 0 : i32
    return %arg0, %c0_i32 : i32, i32
  }
}

</mosaic_0001>

<bundles_post_ra>
// kernel: tpu_custom_call.1
= control target key start
LH: loop header
LB: loop body
LE: loop exit
PB: predicated region body
PF: predicated region fallthrough
CT: control target
= control target key end

     0   :  { %9 = vsyncpa [#allocation3], 0  ;;  %s541_s0 = inlined_call_operand.hbm [shape: u8[1,2048], index: 0, kind: input, shape index: {}]   ;;  %s542_s1 = inlined_call_operand.hbm [shape: u8[1,2048], index: 1, kind: input, shape index: {}]   ;;  %s543_s2 = inlined_call_operand.hbm [shape: f32[1,2048], index: 2, kind: output, shape index: {0}]   ;;  %s544_s3 = inlined_call_operand.hbm [shape: f32[1,2048], index: 3, kind: output, shape index: {1}]  }
   0x1   :  { %10 = vsyncpa [#allocation6], 0 }
   0x2   :  { %11 = vsyncpa [#allocation4], 0 }
   0x3   :  { %12 = vsyncpa [#allocation9], 0  ;;  %s442_s12 = smov [#allocation2]   ;;  %s443_s14 = smov [#allocation5]  }
   0x4   :  { %s19_s13 = sshll.u32 %s442_s12, 4  ;;  %s29_s15 = sshll.u32 %s443_s14, 4  ;;  %s20_s13 = int_to_ptr.vmem [resolvable:$true] %s19_s13  ;;  %s30_s15 = int_to_ptr.vmem [resolvable:$true] %s29_s15 }
   0x5   :  { %s346_s18 = scalar_lea.hbm %s541_s0, 256 }
   0x6   :  { %p347_p0 = scmp.ne.s32.totalorder %s541_s0, %s346_s18  ;;  %p350_p1 = scmp.lt.u32.totalorder %s346_s18, %s541_s0 }
   0x8   :  { %p352_p2 = pnand %p350_p1, %p347_p0 }
   0xa   :  { %355 = shalt.err (!%p352_p2)
}
   0xb   :  { %s356_s23 = scalar_lea.vmem %s20_s13, 256  ;;  %p361_p4 = scmp.lt.s32.totalorder %s20_s13, %s20_s13 }
   0xc   :  { %p357_p3 = scmp.ne.s32.totalorder %s20_s13, %s356_s23  ;;  %p362_p5 = scmp.lt.s32.totalorder %s356_s23, %s356_s23 }
   0xe   :  { %p363_p6 = por %p362_p5, %p361_p4 }
  0x10   :  { %p364_p7 = pnand %p363_p6, %p357_p3 }
  0x12   :  { %367 = shalt.err (!%p364_p7)
}
  0x13   :  { %22 = dma.hbm_to_vmem [thread:$0]  %s541_s0, 256, %s20_s13, [#allocation3]  }
  0x14   :  { %s368_s28 = scalar_lea.hbm %s542_s1, 256 }
  0x15   :  { %p369_p8 = scmp.ne.s32.totalorder %s542_s1, %s368_s28  ;;  %p372_p9 = scmp.lt.u32.totalorder %s368_s28, %s542_s1 }
  0x17   :  { %p374_p10 = pnand %p372_p9, %p369_p8 }
  0x19   :  { %377 = shalt.err (!%p374_p10)
}
  0x1a   :  { %s378_s6 = scalar_lea.vmem %s30_s15, 256  ;;  %p383_p12 = scmp.lt.s32.totalorder %s30_s15, %s30_s15 }
  0x1b   :  { %p379_p11 = scmp.ne.s32.totalorder %s30_s15, %s378_s6  ;;  %p384_p13 = scmp.lt.s32.totalorder %s378_s6, %s378_s6 }
  0x1d   :  { %p385_p0 = por %p384_p13, %p383_p12 }
  0x1f   :  { %p386_p1 = pnand %p385_p0, %p379_p11 }
  0x21   :  { %389 = shalt.err (!%p386_p1)
}
  0x22   :  { %32 = dma.hbm_to_vmem [thread:$0]  %s542_s1, 256, %s30_s15, [#allocation6]  }
  0x23   :  { %434 = dma.done.wait [#allocation3], 256  }
  0x24   :  { %435 = vsyncadd [#allocation3], 4294967040 }
  0x25   :  { %436 = dma.done.wait [#allocation6], 256  }
  0x26   :  { %437 = vsyncadd [#allocation6], 4294967040  ;;  %v84_v0 = vlaneseq  ;;  %v444_v1 = vmov 1966171168   ;;  %v39_v5 = vld [vmem:[#allocation2] sm:$0xff]  ;;  %v40_v7 = vld [vmem:[#allocation2 + $0x8] sm:$0xff] }
  0x27   :  { %v82_v2 = vunpack.c.l.s4 %v444_v1  ;;  %v41_v8 = vunpack.c.0.s8 %v39_v5  ;;  %v42_v9 = vunpack.c.1.s8 %v39_v5  ;;  %v43_v10 = vunpack.c.2.s8 %v39_v5  ;;  %v175_v24 = vld [vmem:[#allocation5] sm:$0xff]  ;;  %v176_v57 = vld [vmem:[#allocation5 + $0x8] sm:$0xff]  ;;  %s445_s1 = smov [#allocation7]  }
  0x28   :  { %v85_v4 = vshrl.u32 %v84_v0, 7  ;;  %v44_v11 = vunpack.c.3.s8 %v39_v5  ;;  %v45_v12 = vunpack.c.0.s8 %v40_v7  ;;  %v46_v13 = vunpack.c.1.s8 %v40_v7  ;;  %s317_s8 = sshll.u32 %s445_s1, 4  ;;  %s318_s8 = int_to_ptr.vmem [resolvable:$true] %s317_s8 }
  0x29   :  { %v83_v3 = vunpack.c.0.s8 %v82_v2  ;;  %v47_v14 = vunpack.c.2.s8 %v40_v7  ;;  %v48_v15 = vunpack.c.3.s8 %v40_v7  ;;  %v49_v16 = vand.u32 255, %v41_v8  ;;  %s390_s9 = scalar_lea.vmem %s318_s8, 256  ;;  %p395_p3 = scmp.lt.s32.totalorder %s318_s8, %s318_s8 }
  0x2a   :  { %v50_v17 = vand.u32 255, %v42_v9  ;;  %v51_v18 = vand.u32 255, %v43_v10  ;;  %v52_v19 = vand.u32 255, %v44_v11  ;;  %v53_v20 = vand.u32 255, %v45_v12  ;;  %p391_p2 = scmp.ne.s32.totalorder %s318_s8, %s390_s9  ;;  %p396_p4 = scmp.lt.s32.totalorder %s390_s9, %s390_s9 }
  0x2b   :  { %v491_v6 = vsub.s32 %v83_v3, %v85_v4  ;;  %v54_v21 = vand.u32 255, %v46_v13  ;;  %v55_v22 = vand.u32 255, %v47_v14  ;;  %v56_v23 = vand.u32 255, %v48_v15 }
  0x2c   :  { %v57_v25 = vcvt.s32.f32 %v49_v16  ;;  %v58_v26 = vcvt.s32.f32 %v50_v17  ;;  %v59_v27 = vcvt.s32.f32 %v51_v18  ;;  %v60_v28 = vcvt.s32.f32 %v52_v19  ;;  %p397_p5 = por %p396_p4, %p395_p3 }
  0x2d   :  { %v61_v29 = vcvt.s32.f32 %v53_v20  ;;  %v62_v30 = vcvt.s32.f32 %v54_v21  ;;  %v63_v31 = vcvt.s32.f32 %v55_v22  ;;  %v64_v32 = vcvt.s32.f32 %v56_v23 }
  0x2e   :  { %v65_v33 = vmul.f32 0.003921569, %v57_v25  ;;  %v66_v34 = vmul.f32 0.003921569, %v58_v26  ;;  %v67_v35 = vmul.f32 0.003921569, %v59_v27  ;;  %v177_v36 = vunpack.c.0.s8 %v175_v24  ;;  %p398_p6 = pnand %p397_p5, %p391_p2 }
  0x2f   :  { %v68_v37 = vmul.f32 0.003921569, %v60_v28  ;;  %v69_v38 = vmul.f32 0.003921569, %v61_v29  ;;  %v70_v39 = vmul.f32 0.003921569, %v62_v30  ;;  %v178_v40 = vunpack.c.1.s8 %v175_v24 }
  0x30   :  { %v87_v41 = vrot.slane %v65_v33, %v491_v6  ;;  %v94_v42 = vrot.slane %v66_v34, %v491_v6  ;;  %v101_v43 = vrot.slane %v67_v35, %v491_v6  ;;  %v71_v44 = vmul.f32 0.003921569, %v63_v31 }
  0x31   :  { %v108_v45 = vrot.slane %v68_v37, %v491_v6  ;;  %v72_v46 = vmul.f32 0.003921569, %v64_v32  ;;  %v132_v47 = vrot.slane %v69_v38, %v491_v6  ;;  %v139_v48 = vrot.slane %v70_v39, %v491_v6 }
  0x32   :  { %v109_v49 = vcombine.low %v87_v41, %v94_v42  ;;  %v146_v50 = vrot.slane %v71_v44, %v491_v6  ;;  %v179_v51 = vunpack.c.2.s8 %v175_v24  ;;  %v180_v52 = vunpack.c.3.s8 %v175_v24 }
  0x33   :  { %v110_v53 = vcombine.low %v101_v43, %v108_v45  ;;  %v153_v54 = vrot.slane %v72_v46, %v491_v6  ;;  %v154_v55 = vcombine.low %v132_v47, %v139_v48  ;;  %v185_v56 = vand.u32 255, %v177_v36 }
  0x34   :  { %v117_v58 = vrot.slane %v109_v49, %v491_v6  ;;  %v186_v59 = vand.u32 255, %v178_v40  ;;  %v187_v60 = vand.u32 255, %v179_v51  ;;  %v188_v61 = vand.u32 255, %v180_v52 }
  0x35   :  { %v124_v62 = vrot.slane %v110_v53, %v491_v6  ;;  %v155_v63 = vcombine.low %v146_v50, %v153_v54  ;;  %v162_v0 = vrot.slane %v154_v55, %v491_v6  ;;  %v193_v1 = vcvt.s32.f32 %v185_v56 }
  0x36   :  { %v194_v2 = vcvt.s32.f32 %v186_v59  ;;  %v195_v3 = vcvt.s32.f32 %v187_v60  ;;  %v196_v4 = vcvt.s32.f32 %v188_v61  ;;  %v181_v5 = vunpack.c.0.s8 %v176_v57 }
  0x37   :  { %v125_v7 = vcombine.low %v117_v58, %v124_v62  ;;  %v169_v8 = vrot.slane %v155_v63, %v491_v6  ;;  %v201_v9 = vmul.f32 0.003921569, %v193_v1  ;;  %v182_v10 = vunpack.c.1.s8 %v176_v57 }
  0x38   :  { %v202_v11 = vmul.f32 0.003921569, %v194_v2  ;;  %v203_v12 = vmul.f32 0.003921569, %v195_v3  ;;  %v204_v13 = vmul.f32 0.003921569, %v196_v4  ;;  %v183_v14 = vunpack.c.2.s8 %v176_v57 }
  0x39   :  { %173 = vst [vmem:[#allocation7] sm:$0xff] %v125_v7  ;;  %v170_v15 = vcombine.low %v162_v0, %v169_v8  ;;  %v223_v16 = vrot.slane %v201_v9, %v491_v6  ;;  %v184_v17 = vunpack.c.3.s8 %v176_v57  ;;  %v189_v18 = vand.u32 255, %v181_v5 }
  0x3a   :  { %v230_v19 = vrot.slane %v202_v11, %v491_v6  ;;  %v237_v20 = vrot.slane %v203_v12, %v491_v6  ;;  %v244_v21 = vrot.slane %v204_v13, %v491_v6  ;;  %v190_v22 = vand.u32 255, %v182_v10 }
  0x3b   :  { %174 = vst [vmem:[#allocation7 + $0x8] sm:$0xff] %v170_v15  ;;  %v191_v23 = vand.u32 255, %v183_v14  ;;  %v192_v24 = vand.u32 255, %v184_v17  ;;  %v197_v25 = vcvt.s32.f32 %v189_v18 }
  0x3c   :  { %v245_v26 = vcombine.low %v223_v16, %v230_v19  ;;  %v246_v27 = vcombine.low %v237_v20, %v244_v21  ;;  %v198_v28 = vcvt.s32.f32 %v190_v22 }
  0x3d   :  { %401 = shalt.err (!%p398_p6)
}
  0x3e   :  { %s402_s12 = scalar_lea.hbm %s543_s2, 256 }
  0x3f   :  { %p403_p7 = scmp.ne.s32.totalorder %s543_s2, %s402_s12  ;;  %p406_p8 = scmp.lt.u32.totalorder %s402_s12, %s543_s2 }
  0x41   :  { %p408_p9 = pnand %p406_p8, %p403_p7 }
  0x43   :  { %411 = shalt.err (!%p408_p9)
}
  0x44   :  { %320 = dma.vmem_to_hbm [thread:$0]  %s318_s8, 256, %s543_s2, [#allocation4]   ;;  %v199_v29 = vcvt.s32.f32 %v191_v23  ;;  %v200_v30 = vcvt.s32.f32 %v192_v24  ;;  %v205_v31 = vmul.f32 0.003921569, %v197_v25  ;;  %v253_v32 = vrot.slane %v245_v26, %v491_v6 }
  0x45   :  { %v260_v33 = vrot.slane %v246_v27, %v491_v6  ;;  %v206_v34 = vmul.f32 0.003921569, %v198_v28  ;;  %s446_s2 = smov [#allocation8]  }
  0x46   :  { %v207_v35 = vmul.f32 0.003921569, %v199_v29  ;;  %v208_v36 = vmul.f32 0.003921569, %v200_v30  ;;  %v268_v37 = vrot.slane %v205_v31, %v491_v6  ;;  %s327_s19 = sshll.u32 %s446_s2, 4  ;;  %s328_s19 = int_to_ptr.vmem [resolvable:$true] %s327_s19 }
  0x47   :  { %v261_v38 = vcombine.low %v253_v32, %v260_v33  ;;  %v275_v39 = vrot.slane %v206_v34, %v491_v6  ;;  %s412_s20 = scalar_lea.vmem %s328_s19, 256  ;;  %p417_p11 = scmp.lt.s32.totalorder %s328_s19, %s328_s19 }
  0x48   :  { %v282_v40 = vrot.slane %v207_v35, %v491_v6  ;;  %v289_v41 = vrot.slane %v208_v36, %v491_v6  ;;  %p413_p10 = scmp.ne.s32.totalorder %s328_s19, %s412_s20  ;;  %p418_p12 = scmp.lt.s32.totalorder %s412_s20, %s412_s20 }
  0x49   :  { %309 = vst [vmem:[#allocation8] sm:$0xff] %v261_v38  ;;  %v290_v42 = vcombine.low %v268_v37, %v275_v39 }
  0x4a   :  { %v291_v43 = vcombine.low %v282_v40, %v289_v41  ;;  %p419_p13 = por %p418_p12, %p417_p11 }
  0x4b   :  { %v298_v44 = vrot.slane %v290_v42, %v491_v6 }
  0x4c   :  { %v305_v45 = vrot.slane %v291_v43, %v491_v6  ;;  %p420_p0 = pnand %p419_p13, %p413_p10 }
  0x4e   :  { %v306_v46 = vcombine.low %v298_v44, %v305_v45 }
  0x50   :  { %310 = vst [vmem:[#allocation8 + $0x8] sm:$0xff] %v306_v46 }
  0x51   :  { %423 = shalt.err (!%p420_p0)
}
  0x52   :  { %s424_s23 = scalar_lea.hbm %s544_s3, 256 }
  0x53   :  { %p425_p1 = scmp.ne.s32.totalorder %s544_s3, %s424_s23  ;;  %p428_p2 = scmp.lt.u32.totalorder %s424_s23, %s544_s3 }
  0x55   :  { %p430_p3 = pnand %p428_p2, %p425_p1 }
  0x57   :  { %433 = shalt.err (!%p430_p3)
}
  0x58   :  { %330 = dma.vmem_to_hbm [thread:$0]  %s328_s19, 256, %s544_s3, [#allocation9]  }
  0x59   :  { %438 = dma.done.wait [#allocation4], 256  }
  0x5a   :  { %439 = vsyncadd [#allocation4], 4294967040 }
  0x5b   :  { %440 = dma.done.wait [#allocation9], 256  }
  0x5c   :  { %441 = vsyncadd [#allocation9], 4294967040 }
  0x5d   :  { %337 = vsyncpa [#allocation3], 1 }
  0x5e   :  { %338 = vsyncpa [#allocation6], 1 }
  0x5f   :  { %339 = vsyncpa [#allocation4], 1 }
  0x60   :  { %340 = vsyncpa [#allocation9], 1 }

</bundles_post_ra>
